<compile_context>
chip_gen: v5e
topology: v5e:2x2
jax: 0.10.0
libtpu: 0.0.40
codegen_flags: <defaults>
</compile_context>

<pallas_src>
import functools
import math

import jax
import jax.numpy as jnp
from jax import lax
from jax.experimental import pallas as pl
from jax.experimental.pallas import tpu as pltpu


# ------------------------------ Pallas kernel -------------------------------

def _vit_encoder_kernel(patch_ref, pw_ref, pb_ref, cls_ref, pos_ref,
                        wqkv_ref, bqkv_ref, wo_ref, bo_ref, g1_ref, be1_ref,
                        w1_ref, b1_ref, w2_ref, b2_ref, g2_ref, be2_ref,
                        o_ref, *, nheads, eps):
    """Grid (batch, layer).  o_ref[b] is resident across the layer axis.

    l == 0 : o_ref[b] <- concat([cls, patches[b] @ Wp + bp]) + pos     (embed)
    every l: o_ref[b] <- LN2(x + MLP(LN1(x + MHA(x)))),  x = o_ref[b]  (post-LN)
    """
    l = pl.program_id(1)

    # --- fused patch embedding, only on the first layer step ---------------
    @pl.when(l == 0)
    def _():
        proj = jnp.dot(patch_ref[0].astype(jnp.bfloat16), pw_ref[...],
                       preferred_element_type=jnp.float32) + pb_ref[...]   # (hw, D)
        pos = pos_ref[0]                                                   # (S, D)
        o_ref[0, 0:1, :] = (cls_ref[...] + pos[0:1, :]).astype(o_ref.dtype)
        o_ref[0, 1:, :] = (proj + pos[1:, :]).astype(o_ref.dtype)

    x = o_ref[0]                                                           # (S, D) f32
    S, D = x.shape
    dh = D // nheads
    scale = 1.0 / math.sqrt(dh)

    # --- attention block: fused QKV, all heads, folded out-proj ------------
    qkv = jnp.dot(x.astype(jnp.bfloat16), wqkv_ref[0],
                  preferred_element_type=jnp.float32) + bqkv_ref[0]        # (S, 3D)
    q = qkv[:, :D]
    k = qkv[:, D:2 * D]
    v = qkv[:, 2 * D:]
    wo = wo_ref[0].astype(jnp.float32)                                     # (D, D)

    dn = (((1,), (1,)), ((), ()))   # QK^T: contract last dims, no explicit k.T
    attn = bo_ref[0]                                                       # (1, D) f32
    for h in range(nheads):
        lo, hi = h * dh, (h + 1) * dh
        qh, kh, vh = q[:, lo:hi], k[:, lo:hi], v[:, lo:hi]                 # (S, dh)
        s = lax.dot_general(qh, kh, dn, preferred_element_type=jnp.float32) * scale
        s = s - jnp.max(s, axis=-1, keepdims=True)
        p = jnp.exp(s)
        p = p * pl.reciprocal(jnp.sum(p, axis=-1, keepdims=True), approx=True)
        ctx = jnp.dot(p, vh, preferred_element_type=jnp.float32)           # (S, dh)
        attn = attn + jnp.dot(ctx, wo[lo:hi, :], preferred_element_type=jnp.float32)

    y = x + attn                                                           # residual
    mu = jnp.mean(y, axis=-1, keepdims=True)
    var = jnp.mean(jnp.square(y - mu), axis=-1, keepdims=True)
    x = (y - mu) * lax.rsqrt(var + eps) * g1_ref[0] + be1_ref[0]           # post-LN1

    # --- MLP block: linear1 + ReLU + linear2 + residual + post-LN2 ---------
    hdd = jnp.dot(x.astype(jnp.bfloat16), w1_ref[0],
                  preferred_element_type=jnp.float32) + b1_ref[0]          # (S, Dff)
    hdd = jnp.maximum(hdd, 0.0)
    y = jnp.dot(hdd.astype(jnp.bfloat16), w2_ref[0],
                preferred_element_type=jnp.float32) + b2_ref[0]            # (S, D)
    y = x + y                                                              # residual
    mu = jnp.mean(y, axis=-1, keepdims=True)
    var = jnp.mean(jnp.square(y - mu), axis=-1, keepdims=True)
    o_ref[0] = ((y - mu) * lax.rsqrt(var + eps) * g2_ref[0]
                + be2_ref[0]).astype(o_ref.dtype)


# ------------------------------ Pallas wrapper -------------------------------

def vit_encoder(patches, params, *, nheads, eps=1e-5):
    """patches: [N, hw, Pd] f32  ->  encoder output [N, S, D] f32 (one pallas_call)."""
    N, hw, Pd = patches.shape
    _, S, D = params["pos"].shape
    L = params["wqkv"].shape[0]
    Dff = params["w1"].shape[2]

    rep = lambda *blk: pl.BlockSpec(blk, lambda i, l: (0,) * len(blk))      # replicated
    per_layer = lambda *blk: pl.BlockSpec((1,) + blk, lambda i, l: (l,) + (0,) * len(blk))

    return pl.pallas_call(
        functools.partial(_vit_encoder_kernel, nheads=nheads, eps=eps),
        out_shape=jax.ShapeDtypeStruct((N, S, D), jnp.float32),
        grid=(N, L),
        in_specs=[
            pl.BlockSpec((1, hw, Pd), lambda i, l: (i, 0, 0)),   # patches
            rep(Pd, D),                                          # proj_w
            rep(1, D),                                           # proj_b
            rep(1, D),                                           # cls
            rep(1, S, D),                                        # pos
            per_layer(D, 3 * D),                                 # wqkv (stacked)
            per_layer(1, 3 * D),                                 # bqkv
            per_layer(D, D),                                     # wo
            per_layer(1, D),                                     # bo
            per_layer(1, D),                                     # ln1_g
            per_layer(1, D),                                     # ln1_b
            per_layer(D, Dff),                                   # w1
            per_layer(1, Dff),                                   # b1
            per_layer(Dff, D),                                   # w2
            per_layer(1, D),                                     # b2
            per_layer(1, D),                                     # ln2_g
            per_layer(1, D),                                     # ln2_b
        ],
        out_specs=pl.BlockSpec((1, S, D), lambda i, l: (i, 0, 0)),  # resident over l
        compiler_params=pltpu.CompilerParams(
            dimension_semantics=("parallel", "arbitrary")),
    )(patches, params["proj_w"], params["proj_b"], params["cls"], params["pos"],
      params["wqkv"], params["bqkv"], params["wo"], params["bo"],
      params["ln1_g"], params["ln1_b"],
      params["w1"], params["b1"], params["w2"], params["b2"],
      params["ln2_g"], params["ln2_b"])


# ------------------------------- ViT forward --------------------------------

# TODO(synk): TransformerEncoder internals are not given in the snippet; assumed a
# standard post-LN encoder layer (x = LN(x + MHA(x)); x = LN(x + FFN_relu(x))), dropout=0.
def vit_forward(x, params, *, patch_size, nheads, net_type="classification"):
    N, C, H, W = x.shape
    h, w = H // patch_size, W // patch_size
    # rearrange 'n c (h px) (w py) -> n (h w) (px py c)'  (layout-only glue)
    patches = x.reshape(N, C, h, patch_size, w, patch_size)
    patches = patches.transpose(0, 2, 4, 3, 5, 1).reshape(
        N, h * w, patch_size * patch_size * C)

    out = vit_encoder(patches, params, nheads=nheads)                      # [N, S, D]

    if net_type.lower() in ["classification", "cls", "clf"]:
        # Tiny lane-sparse [N, D] @ [D, num_classes] head: left to plain XLA
        # (a standalone pallas_call here is pure launch overhead).
        return out[:, 0] @ params["fc_w"] + params["fc_b"]
    else:
        return out[:, 1:]


# ------------------------------ Parameter init -------------------------------

def init_params(key, *, patch_dim, d_model, num_layers, num_classes, seq_len):
    ks = iter(jax.random.split(key, 8 + 16 * num_layers))

    def nrm(shape, scale=0.02, dtype=jnp.bfloat16):
        return (scale * jax.random.normal(next(ks), shape)).astype(dtype)

    d_ff = 4 * d_model
    # Weights stored kernel-ready: bf16 matmul weights (stacked over layers),
    # (L,1,N)-shaped f32 biases / LN params.
    params = {
        "proj_w": nrm((patch_dim, d_model)),
        "proj_b": jnp.zeros((1, d_model), jnp.float32),
        "cls": jax.random.normal(next(ks), (1, d_model)).astype(jnp.float32),
        "pos": jax.random.normal(next(ks), (1, seq_len, d_model)).astype(jnp.float32),
        "fc_w": nrm((d_model, num_classes), dtype=jnp.float32),
        "fc_b": jnp.zeros((num_classes,), jnp.float32),
    }

    wqkv, wo, w1, w2 = [], [], [], []
    for _ in range(num_layers):
        wq = nrm((d_model, d_model))
        wk = nrm((d_model, d_model))
        wv = nrm((d_model, d_model))
        wqkv.append(jnp.concatenate([wq, wk, wv], axis=1))   # fused [D, 3D] bf16
        wo.append(nrm((d_model, d_model)))
        w1.append(nrm((d_model, d_ff)))
        w2.append(nrm((d_ff, d_model)))

    L = num_layers
    params.update({
        "wqkv": jnp.stack(wqkv),                                  # (L, D, 3D) bf16
        "bqkv": jnp.zeros((L, 1, 3 * d_model), jnp.float32),
        "wo": jnp.stack(wo),                                      # (L, D, D) bf16
        "bo": jnp.zeros((L, 1, d_model), jnp.float32),
        "ln1_g": jnp.ones((L, 1, d_model), jnp.float32),
        "ln1_b": jnp.zeros((L, 1, d_model), jnp.float32),
        "w1": jnp.stack(w1),                                      # (L, D, Dff) bf16
        "b1": jnp.zeros((L, 1, d_ff), jnp.float32),
        "w2": jnp.stack(w2),                                      # (L, Dff, D) bf16
        "b2": jnp.zeros((L, 1, d_model), jnp.float32),
        "ln2_g": jnp.ones((L, 1, d_model), jnp.float32),
        "ln2_b": jnp.zeros((L, 1, d_model), jnp.float32),
    })
    return params


# ----------------------------------- main ------------------------------------

if __name__ == "__main__":
    # Small ViT config consistent with the module's forward.
    batch, channels, img_size, patch_size = 2, 4, 16, 8
    d_model, nheads, num_layers, num_classes = 32, 4, 2, 10
    num_patches = (img_size // patch_size) ** 2            # 4
    seq_len = num_patches + 1                               # 5 (cls token)
    patch_dim = patch_size * patch_size * channels          # 256

    key = jax.random.PRNGKey(0)
    kx, kp = jax.random.split(key)
    x = jax.random.normal(kx, (batch, channels, img_size, img_size), dtype=jnp.float32)
    params = init_params(kp, patch_dim=patch_dim, d_model=d_model,
                         num_layers=num_layers, num_classes=num_classes, seq_len=seq_len)

    fwd = jax.jit(functools.partial(vit_forward, patch_size=patch_size,
                                    nheads=nheads, net_type="classification"))
    logits = jax.block_until_ready(fwd(x, params))
    assert logits.shape == (batch, num_classes)
    assert bool(jnp.all(jnp.isfinite(logits)))
    print("KERNEL_OK")
</pallas_src>

<mosaic_0001>
module attributes {stable_mosaic.version = 11 : i64} {
  func.func @_vit_encoder_kernel(%arg0: i32, %arg1: i32, %arg2: memref<1x4x256xf32, #tpu.memory_space<vmem>>, %arg3: memref<256x32xbf16, #tpu.memory_space<vmem>>, %arg4: memref<1x32xf32, #tpu.memory_space<vmem>>, %arg5: memref<1x32xf32, #tpu.memory_space<vmem>>, %arg6: memref<1x5x32xf32, #tpu.memory_space<vmem>>, %arg7: memref<1x32x96xbf16, #tpu.memory_space<vmem>>, %arg8: memref<1x1x96xf32, #tpu.memory_space<vmem>>, %arg9: memref<1x32x32xbf16, #tpu.memory_space<vmem>>, %arg10: memref<1x1x32xf32, #tpu.memory_space<vmem>>, %arg11: memref<1x1x32xf32, #tpu.memory_space<vmem>>, %arg12: memref<1x1x32xf32, #tpu.memory_space<vmem>>, %arg13: memref<1x32x128xbf16, #tpu.memory_space<vmem>>, %arg14: memref<1x1x128xf32, #tpu.memory_space<vmem>>, %arg15: memref<1x128x32xbf16, #tpu.memory_space<vmem>>, %arg16: memref<1x1x32xf32, #tpu.memory_space<vmem>>, %arg17: memref<1x1x32xf32, #tpu.memory_space<vmem>>, %arg18: memref<1x1x32xf32, #tpu.memory_space<vmem>>, %arg19: memref<1x5x32xf32, #tpu.memory_space<vmem>>) attributes {dimension_semantics = [#tpu.dimension_semantics<parallel>, #tpu.dimension_semantics<arbitrary>], iteration_bounds = array<i64: 2, 2>, scalar_prefetch = 0 : i64, scratch_operands = 0 : i64, tpu.core_type = #tpu.core_type<tc>, window_params = [{transform_indices = @transform_0, window_bounds = array<i64: 1, 4, 256>}, {pipeline_mode = #tpu.pipeline_mode<synchronous>, transform_indices = @transform_1, window_bounds = array<i64: 256, 32>}, {pipeline_mode = #tpu.pipeline_mode<synchronous>, transform_indices = @transform_2, window_bounds = array<i64: 1, 32>}, {pipeline_mode = #tpu.pipeline_mode<synchronous>, transform_indices = @transform_3, window_bounds = array<i64: 1, 32>}, {pipeline_mode = #tpu.pipeline_mode<synchronous>, transform_indices = @transform_4, window_bounds = array<i64: 1, 5, 32>}, {transform_indices = @transform_5, window_bounds = array<i64: 1, 32, 96>}, {transform_indices = @transform_6, window_bounds = array<i64: 1, 1, 96>}, {transform_indices = @transform_7, window_bounds = array<i64: 1, 32, 32>}, {transform_indices = @transform_8, window_bounds = array<i64: 1, 1, 32>}, {transform_indices = @transform_9, window_bounds = array<i64: 1, 1, 32>}, {transform_indices = @transform_10, window_bounds = array<i64: 1, 1, 32>}, {transform_indices = @transform_11, window_bounds = array<i64: 1, 32, 128>}, {transform_indices = @transform_12, window_bounds = array<i64: 1, 1, 128>}, {transform_indices = @transform_13, window_bounds = array<i64: 1, 128, 32>}, {transform_indices = @transform_14, window_bounds = array<i64: 1, 1, 32>}, {transform_indices = @transform_15, window_bounds = array<i64: 1, 1, 32>}, {transform_indices = @transform_16, window_bounds = array<i64: 1, 1, 32>}, {transform_indices = @transform_17, window_bounds = array<i64: 1, 5, 32>}]} {
    %c0_i32 = arith.constant 0 : i32
    %0 = arith.cmpi eq, %arg1, %c0_i32 : i32
    %1 = arith.extui %0 : i1 to i32
    %c0_i32_0 = arith.constant 0 : i32
    %2 = arith.cmpi ne, %1, %c0_i32_0 : i32
    scf.if %2 {
      %c0_79 = arith.constant 0 : index
      %c0_80 = arith.constant 0 : index
      %c0_81 = arith.constant 0 : index
      %177 = vector.load %arg2[%c0_79, %c0_80, %c0_81] : memref<1x4x256xf32, #tpu.memory_space<vmem>>, vector<1x4x256xf32>
      %178 = vector.shape_cast %177 : vector<1x4x256xf32> to vector<4x256xf32>
      %179 = arith.truncf %178 : vector<4x256xf32> to vector<4x256xbf16>
      %c0_82 = arith.constant 0 : index
      %c0_83 = arith.constant 0 : index
      %180 = vector.load %arg3[%c0_82, %c0_83] : memref<256x32xbf16, #tpu.memory_space<vmem>>, vector<256x32xbf16>
      %cst_84 = arith.constant dense<0.000000e+00> : vector<4x32xf32>
      %181 = tpu.matmul %179, %180, %cst_84 {dimension_numbers = #tpu.dot_dimension_numbers<[1], [0], [0], [1], [0, 0, 1, 1], [], []>} : vector<4x256xbf16>, vector<256x32xbf16>, vector<4x32xf32> -> vector<4x32xf32>
      %c0_85 = arith.constant 0 : index
      %c0_86 = arith.constant 0 : index
      %182 = vector.load %arg4[%c0_85, %c0_86] : memref<1x32xf32, #tpu.memory_space<vmem>>, vector<1x32xf32>
      %183 = vector.broadcast %182 : vector<1x32xf32> to vector<4x32xf32>
      %184 = arith.addf %181, %183 : vector<4x32xf32>
      %c0_87 = arith.constant 0 : index
      %c0_88 = arith.constant 0 : index
      %c0_89 = arith.constant 0 : index
      %185 = vector.load %arg6[%c0_87, %c0_88, %c0_89] : memref<1x5x32xf32, #tpu.memory_space<vmem>>, vector<1x5x32xf32>
      %186 = vector.shape_cast %185 : vector<1x5x32xf32> to vector<5x32xf32>
      %c0_90 = arith.constant 0 : index
      %c0_91 = arith.constant 0 : index
      %187 = vector.load %arg5[%c0_90, %c0_91] : memref<1x32xf32, #tpu.memory_space<vmem>>, vector<1x32xf32>
      %188 = vector.extract_strided_slice %186 {offsets = [0, 0], sizes = [1, 32], strides = [1, 1]} : vector<5x32xf32> to vector<1x32xf32>
      %189 = arith.addf %187, %188 : vector<1x32xf32>
      %c0_92 = arith.constant 0 : index
      %c0_93 = arith.constant 0 : index
      %c0_94 = arith.constant 0 : index
      %190 = vector.load %arg19[%c0_92, %c0_93, %c0_94] : memref<1x5x32xf32, #tpu.memory_space<vmem>>, vector<1x1x32xf32>
      %191 = vector.shape_cast %190 : vector<1x1x32xf32> to vector<1x32xf32>
      %192 = vector.shape_cast %189 : vector<1x32xf32> to vector<1x1x32xf32>
      tpu.vector_store %arg19[%c0_92, %c0_93, %c0_94], %192 {strides = array<i32>} : memref<1x5x32xf32, #tpu.memory_space<vmem>>, vector<1x1x32xf32>,
      %193 = vector.extract_strided_slice %186 {offsets = [1, 0], sizes = [4, 32], strides = [1, 1]} : vector<5x32xf32> to vector<4x32xf32>
      %194 = arith.addf %184, %193 : vector<4x32xf32>
      %c0_95 = arith.constant 0 : index
      %c1 = arith.constant 1 : index
      %c0_96 = arith.constant 0 : index
      %195 = vector.load %arg19[%c0_95, %c1, %c0_96] : memref<1x5x32xf32, #tpu.memory_space<vmem>>, vector<1x4x32xf32>
      %196 = vector.shape_cast %195 : vector<1x4x32xf32> to vector<4x32xf32>
      %197 = vector.shape_cast %194 : vector<4x32xf32> to vector<1x4x32xf32>
      tpu.vector_store %arg19[%c0_95, %c1, %c0_96], %197 {strides = array<i32>} : memref<1x5x32xf32, #tpu.memory_space<vmem>>, vector<1x4x32xf32>,
    } else {
    }
    %c0 = arith.constant 0 : index
    %c0_1 = arith.constant 0 : index
    %c0_2 = arith.constant 0 : index
    %3 = vector.load %arg19[%c0, %c0_1, %c0_2] : memref<1x5x32xf32, #tpu.memory_space<vmem>>, vector<1x5x32xf32>
    %4 = vector.shape_cast %3 : vector<1x5x32xf32> to vector<5x32xf32>
    %5 = arith.truncf %4 : vector<5x32xf32> to vector<5x32xbf16>
    %c0_3 = arith.constant 0 : index
    %c0_4 = arith.constant 0 : index
    %c0_5 = arith.constant 0 : index
    %6 = vector.load %arg7[%c0_3, %c0_4, %c0_5] : memref<1x32x96xbf16, #tpu.memory_space<vmem>>, vector<1x32x96xbf16>
    %7 = vector.shape_cast %6 : vector<1x32x96xbf16> to vector<32x96xbf16>
    %cst = arith.constant dense<0.000000e+00> : vector<5x96xf32>
    %8 = tpu.matmul %5, %7, %cst {dimension_numbers = #tpu.dot_dimension_numbers<[1], [0], [0], [1], [0, 0, 1, 1], [], []>} : vector<5x32xbf16>, vector<32x96xbf16>, vector<5x96xf32> -> vector<5x96xf32>
    %c0_6 = arith.constant 0 : index
    %c0_7 = arith.constant 0 : index
    %c0_8 = arith.constant 0 : index
    %9 = vector.load %arg8[%c0_6, %c0_7, %c0_8] : memref<1x1x96xf32, #tpu.memory_space<vmem>>, vector<1x1x96xf32>
    %10 = vector.shape_cast %9 : vector<1x1x96xf32> to vector<1x96xf32>
    %11 = vector.broadcast %10 : vector<1x96xf32> to vector<5x96xf32>
    %12 = arith.addf %8, %11 : vector<5x96xf32>
    %13 = vector.extract_strided_slice %12 {offsets = [0, 0], sizes = [5, 32], strides = [1, 1]} : vector<5x96xf32> to vector<5x32xf32>
    %14 = vector.extract_strided_slice %12 {offsets = [0, 32], sizes = [5, 32], strides = [1, 1]} : vector<5x96xf32> to vector<5x32xf32>
    %15 = vector.extract_strided_slice %12 {offsets = [0, 64], sizes = [5, 32], strides = [1, 1]} : vector<5x96xf32> to vector<5x32xf32>
    %c0_9 = arith.constant 0 : index
    %c0_10 = arith.constant 0 : index
    %c0_11 = arith.constant 0 : index
    %16 = vector.load %arg9[%c0_9, %c0_10, %c0_11] : memref<1x32x32xbf16, #tpu.memory_space<vmem>>, vector<1x32x32xbf16>
    %17 = vector.shape_cast %16 : vector<1x32x32xbf16> to vector<32x32xbf16>
    %18 = arith.extf %17 : vector<32x32xbf16> to vector<32x32xf32>
    %c0_12 = arith.constant 0 : index
    %c0_13 = arith.constant 0 : index
    %c0_14 = arith.constant 0 : index
    %19 = vector.load %arg10[%c0_12, %c0_13, %c0_14] : memref<1x1x32xf32, #tpu.memory_space<vmem>>, vector<1x1x32xf32>
    %20 = vector.shape_cast %19 : vector<1x1x32xf32> to vector<1x32xf32>
    %21 = vector.extract_strided_slice %13 {offsets = [0, 0], sizes = [5, 8], strides = [1, 1]} : vector<5x32xf32> to vector<5x8xf32>
    %22 = vector.extract_strided_slice %14 {offsets = [0, 0], sizes = [5, 8], strides = [1, 1]} : vector<5x32xf32> to vector<5x8xf32>
    %23 = vector.extract_strided_slice %15 {offsets = [0, 0], sizes = [5, 8], strides = [1, 1]} : vector<5x32xf32> to vector<5x8xf32>
    %cst_15 = arith.constant dense<0.000000e+00> : vector<5x5xf32>
    %24 = tpu.matmul %21, %22, %cst_15 {dimension_numbers = #tpu.dot_dimension_numbers<[1], [1], [0], [0], [0, 0, 1, 0], [], []>} : vector<5x8xf32>, vector<5x8xf32>, vector<5x5xf32> -> vector<5x5xf32>
    %cst_16 = arith.constant 0.353553385 : f32
    %25 = vector.broadcast %cst_16 : f32 to vector<5x5xf32>
    %26 = arith.mulf %24, %25 : vector<5x5xf32>
    %cst_17 = arith.constant dense<0xFF800000> : vector<5xf32>
    %27 = vector.multi_reduction <maximumf>, %26, %cst_17 [1] : vector<5x5xf32> to vector<5xf32>
    %28 = vector.shape_cast %27 : vector<5xf32> to vector<5x1xf32>
    %29 = vector.broadcast %28 : vector<5x1xf32> to vector<5x5xf32>
    %30 = arith.subf %26, %29 : vector<5x5xf32>
    %31 = math.exp %30 : vector<5x5xf32>
    %cst_18 = arith.constant dense<0.000000e+00> : vector<5xf32>
    %32 = vector.multi_reduction <add>, %31, %cst_18 [1] : vector<5x5xf32> to vector<5xf32>
    %33 = vector.shape_cast %32 : vector<5xf32> to vector<5x1xf32>
    %34 = tpu.reciprocal %33 {approx = true} : vector<5x1xf32> -> vector<5x1xf32>
    %35 = vector.broadcast %34 : vector<5x1xf32> to vector<5x5xf32>
    %36 = arith.mulf %31, %35 : vector<5x5xf32>
    %cst_19 = arith.constant dense<0.000000e+00> : vector<5x8xf32>
    %37 = tpu.matmul %36, %23, %cst_19 {dimension_numbers = #tpu.dot_dimension_numbers<[1], [0], [0], [1], [0, 0, 1, 1], [], []>} : vector<5x5xf32>, vector<5x8xf32>, vector<5x8xf32> -> vector<5x8xf32>
    %38 = vector.extract_strided_slice %18 {offsets = [0, 0], sizes = [8, 32], strides = [1, 1]} : vector<32x32xf32> to vector<8x32xf32>
    %cst_20 = arith.constant dense<0.000000e+00> : vector<5x32xf32>
    %39 = tpu.matmul %37, %38, %cst_20 {dimension_numbers = #tpu.dot_dimension_numbers<[1], [0], [0], [1], [0, 0, 1, 1], [], []>} : vector<5x8xf32>, vector<8x32xf32>, vector<5x32xf32> -> vector<5x32xf32>
    %40 = vector.broadcast %20 : vector<1x32xf32> to vector<5x32xf32>
    %41 = arith.addf %40, %39 : vector<5x32xf32>
    %42 = vector.extract_strided_slice %13 {offsets = [0, 8], sizes = [5, 8], strides = [1, 1]} : vector<5x32xf32> to vector<5x8xf32>
    %43 = vector.extract_strided_slice %14 {offsets = [0, 8], sizes = [5, 8], strides = [1, 1]} : vector<5x32xf32> to vector<5x8xf32>
    %44 = vector.extract_strided_slice %15 {offsets = [0, 8], sizes = [5, 8], strides = [1, 1]} : vector<5x32xf32> to vector<5x8xf32>
    %cst_21 = arith.constant dense<0.000000e+00> : vector<5x5xf32>
    %45 = tpu.matmul %42, %43, %cst_21 {dimension_numbers = #tpu.dot_dimension_numbers<[1], [1], [0], [0], [0, 0, 1, 0], [], []>} : vector<5x8xf32>, vector<5x8xf32>, vector<5x5xf32> -> vector<5x5xf32>
    %cst_22 = arith.constant 0.353553385 : f32
    %46 = vector.broadcast %cst_22 : f32 to vector<5x5xf32>
    %47 = arith.mulf %45, %46 : vector<5x5xf32>
    %cst_23 = arith.constant dense<0xFF800000> : vector<5xf32>
    %48 = vector.multi_reduction <maximumf>, %47, %cst_23 [1] : vector<5x5xf32> to vector<5xf32>
    %49 = vector.shape_cast %48 : vector<5xf32> to vector<5x1xf32>
    %50 = vector.broadcast %49 : vector<5x1xf32> to vector<5x5xf32>
    %51 = arith.subf %47, %50 : vector<5x5xf32>
    %52 = math.exp %51 : vector<5x5xf32>
    %cst_24 = arith.constant dense<0.000000e+00> : vector<5xf32>
    %53 = vector.multi_reduction <add>, %52, %cst_24 [1] : vector<5x5xf32> to vector<5xf32>
    %54 = vector.shape_cast %53 : vector<5xf32> to vector<5x1xf32>
    %55 = tpu.reciprocal %54 {approx = true} : vector<5x1xf32> -> vector<5x1xf32>
    %56 = vector.broadcast %55 : vector<5x1xf32> to vector<5x5xf32>
    %57 = arith.mulf %52, %56 : vector<5x5xf32>
    %cst_25 = arith.constant dense<0.000000e+00> : vector<5x8xf32>
    %58 = tpu.matmul %57, %44, %cst_25 {dimension_numbers = #tpu.dot_dimension_numbers<[1], [0], [0], [1], [0, 0, 1, 1], [], []>} : vector<5x5xf32>, vector<5x8xf32>, vector<5x8xf32> -> vector<5x8xf32>
    %59 = vector.extract_strided_slice %18 {offsets = [8, 0], sizes = [8, 32], strides = [1, 1]} : vector<32x32xf32> to vector<8x32xf32>
    %cst_26 = arith.constant dense<0.000000e+00> : vector<5x32xf32>
    %60 = tpu.matmul %58, %59, %cst_26 {dimension_numbers = #tpu.dot_dimension_numbers<[1], [0], [0], [1], [0, 0, 1, 1], [], []>} : vector<5x8xf32>, vector<8x32xf32>, vector<5x32xf32> -> vector<5x32xf32>
    %61 = arith.addf %41, %60 : vector<5x32xf32>
    %62 = vector.extract_strided_slice %13 {offsets = [0, 16], sizes = [5, 8], strides = [1, 1]} : vector<5x32xf32> to vector<5x8xf32>
    %63 = vector.extract_strided_slice %14 {offsets = [0, 16], sizes = [5, 8], strides = [1, 1]} : vector<5x32xf32> to vector<5x8xf32>
    %64 = vector.extract_strided_slice %15 {offsets = [0, 16], sizes = [5, 8], strides = [1, 1]} : vector<5x32xf32> to vector<5x8xf32>
    %cst_27 = arith.constant dense<0.000000e+00> : vector<5x5xf32>
    %65 = tpu.matmul %62, %63, %cst_27 {dimension_numbers = #tpu.dot_dimension_numbers<[1], [1], [0], [0], [0, 0, 1, 0], [], []>} : vector<5x8xf32>, vector<5x8xf32>, vector<5x5xf32> -> vector<5x5xf32>
    %cst_28 = arith.constant 0.353553385 : f32
    %66 = vector.broadcast %cst_28 : f32 to vector<5x5xf32>
    %67 = arith.mulf %65, %66 : vector<5x5xf32>
    %cst_29 = arith.constant dense<0xFF800000> : vector<5xf32>
    %68 = vector.multi_reduction <maximumf>, %67, %cst_29 [1] : vector<5x5xf32> to vector<5xf32>
    %69 = vector.shape_cast %68 : vector<5xf32> to vector<5x1xf32>
    %70 = vector.broadcast %69 : vector<5x1xf32> to vector<5x5xf32>
    %71 = arith.subf %67, %70 : vector<5x5xf32>
    %72 = math.exp %71 : vector<5x5xf32>
    %cst_30 = arith.constant dense<0.000000e+00> : vector<5xf32>
    %73 = vector.multi_reduction <add>, %72, %cst_30 [1] : vector<5x5xf32> to vector<5xf32>
    %74 = vector.shape_cast %73 : vector<5xf32> to vector<5x1xf32>
    %75 = tpu.reciprocal %74 {approx = true} : vector<5x1xf32> -> vector<5x1xf32>
    %76 = vector.broadcast %75 : vector<5x1xf32> to vector<5x5xf32>
    %77 = arith.mulf %72, %76 : vector<5x5xf32>
    %cst_31 = arith.constant dense<0.000000e+00> : vector<5x8xf32>
    %78 = tpu.matmul %77, %64, %cst_31 {dimension_numbers = #tpu.dot_dimension_numbers<[1], [0], [0], [1], [0, 0, 1, 1], [], []>} : vector<5x5xf32>, vector<5x8xf32>, vector<5x8xf32> -> vector<5x8xf32>
    %79 = vector.extract_strided_slice %18 {offsets = [16, 0], sizes = [8, 32], strides = [1, 1]} : vector<32x32xf32> to vector<8x32xf32>
    %cst_32 = arith.constant dense<0.000000e+00> : vector<5x32xf32>
    %80 = tpu.matmul %78, %79, %cst_32 {dimension_numbers = #tpu.dot_dimension_numbers<[1], [0], [0], [1], [0, 0, 1, 1], [], []>} : vector<5x8xf32>, vector<8x32xf32>, vector<5x32xf32> -> vector<5x32xf32>
    %81 = arith.addf %61, %80 : vector<5x32xf32>
    %82 = vector.extract_strided_slice %13 {offsets = [0, 24], sizes = [5, 8], strides = [1, 1]} : vector<5x32xf32> to vector<5x8xf32>
    %83 = vector.extract_strided_slice %14 {offsets = [0, 24], sizes = [5, 8], strides = [1, 1]} : vector<5x32xf32> to vector<5x8xf32>
    %84 = vector.extract_strided_slice %15 {offsets = [0, 24], sizes = [5, 8], strides = [1, 1]} : vector<5x32xf32> to vector<5x8xf32>
    %cst_33 = arith.constant dense<0.000000e+00> : vector<5x5xf32>
    %85 = tpu.matmul %82, %83, %cst_33 {dimension_numbers = #tpu.dot_dimension_numbers<[1], [1], [0], [0], [0, 0, 1, 0], [], []>} : vector<5x8xf32>, vector<5x8xf32>, vector<5x5xf32> -> vector<5x5xf32>
    %cst_34 = arith.constant 0.353553385 : f32
    %86 = vector.broadcast %cst_34 : f32 to vector<5x5xf32>
    %87 = arith.mulf %85, %86 : vector<5x5xf32>
    %cst_35 = arith.constant dense<0xFF800000> : vector<5xf32>
    %88 = vector.multi_reduction <maximumf>, %87, %cst_35 [1] : vector<5x5xf32> to vector<5xf32>
    %89 = vector.shape_cast %88 : vector<5xf32> to vector<5x1xf32>
    %90 = vector.broadcast %89 : vector<5x1xf32> to vector<5x5xf32>
    %91 = arith.subf %87, %90 : vector<5x5xf32>
    %92 = math.exp %91 : vector<5x5xf32>
    %cst_36 = arith.constant dense<0.000000e+00> : vector<5xf32>
    %93 = vector.multi_reduction <add>, %92, %cst_36 [1] : vector<5x5xf32> to vector<5xf32>
    %94 = vector.shape_cast %93 : vector<5xf32> to vector<5x1xf32>
    %95 = tpu.reciprocal %94 {approx = true} : vector<5x1xf32> -> vector<5x1xf32>
    %96 = vector.broadcast %95 : vector<5x1xf32> to vector<5x5xf32>
    %97 = arith.mulf %92, %96 : vector<5x5xf32>
    %cst_37 = arith.constant dense<0.000000e+00> : vector<5x8xf32>
    %98 = tpu.matmul %97, %84, %cst_37 {dimension_numbers = #tpu.dot_dimension_numbers<[1], [0], [0], [1], [0, 0, 1, 1], [], []>} : vector<5x5xf32>, vector<5x8xf32>, vector<5x8xf32> -> vector<5x8xf32>
    %99 = vector.extract_strided_slice %18 {offsets = [24, 0], sizes = [8, 32], strides = [1, 1]} : vector<32x32xf32> to vector<8x32xf32>
    %cst_38 = arith.constant dense<0.000000e+00> : vector<5x32xf32>
    %100 = tpu.matmul %98, %99, %cst_38 {dimension_numbers = #tpu.dot_dimension_numbers<[1], [0], [0], [1], [0, 0, 1, 1], [], []>} : vector<5x8xf32>, vector<8x32xf32>, vector<5x32xf32> -> vector<5x32xf32>
    %101 = arith.addf %81, %100 : vector<5x32xf32>
    %102 = arith.addf %4, %101 : vector<5x32xf32>
    %cst_39 = arith.constant dense<0.000000e+00> : vector<5xf32>
    %103 = vector.multi_reduction <add>, %102, %cst_39 [1] : vector<5x32xf32> to vector<5xf32>
    %104 = vector.shape_cast %103 : vector<5xf32> to vector<5x1xf32>
    %cst_40 = arith.constant 3.200000e+01 : f32
    %105 = vector.broadcast %cst_40 : f32 to vector<5x1xf32>
    %106 = arith.divf %104, %105 : vector<5x1xf32>
    %107 = vector.broadcast %106 : vector<5x1xf32> to vector<5x32xf32>
    %108 = arith.subf %102, %107 : vector<5x32xf32>
    %109 = arith.mulf %108, %108 : vector<5x32xf32>
    %cst_41 = arith.constant dense<0.000000e+00> : vector<5xf32>
    %110 = vector.multi_reduction <add>, %109, %cst_41 [1] : vector<5x32xf32> to vector<5xf32>
    %111 = vector.shape_cast %110 : vector<5xf32> to vector<5x1xf32>
    %cst_42 = arith.constant 3.200000e+01 : f32
    %112 = vector.broadcast %cst_42 : f32 to vector<5x1xf32>
    %113 = arith.divf %111, %112 : vector<5x1xf32>
    %114 = vector.broadcast %106 : vector<5x1xf32> to vector<5x32xf32>
    %115 = arith.subf %102, %114 : vector<5x32xf32>
    %cst_43 = arith.constant 9.99999974E-6 : f32
    %116 = vector.broadcast %cst_43 : f32 to vector<5x1xf32>
    %117 = arith.addf %113, %116 : vector<5x1xf32>
    %118 = math.rsqrt %117 : vector<5x1xf32>
    %119 = vector.broadcast %118 : vector<5x1xf32> to vector<5x32xf32>
    %120 = arith.mulf %115, %119 : vector<5x32xf32>
    %c0_44 = arith.constant 0 : index
    %c0_45 = arith.constant 0 : index
    %c0_46 = arith.constant 0 : index
    %121 = vector.load %arg11[%c0_44, %c0_45, %c0_46] : memref<1x1x32xf32, #tpu.memory_space<vmem>>, vector<1x1x32xf32>
    %122 = vector.shape_cast %121 : vector<1x1x32xf32> to vector<1x32xf32>
    %123 = vector.broadcast %122 : vector<1x32xf32> to vector<5x32xf32>
    %124 = arith.mulf %120, %123 : vector<5x32xf32>
    %c0_47 = arith.constant 0 : index
    %c0_48 = arith.constant 0 : index
    %c0_49 = arith.constant 0 : index
    %125 = vector.load %arg12[%c0_47, %c0_48, %c0_49] : memref<1x1x32xf32, #tpu.memory_space<vmem>>, vector<1x1x32xf32>
    %126 = vector.shape_cast %125 : vector<1x1x32xf32> to vector<1x32xf32>
    %127 = vector.broadcast %126 : vector<1x32xf32> to vector<5x32xf32>
    %128 = arith.addf %124, %127 : vector<5x32xf32>
    %129 = arith.truncf %128 : vector<5x32xf32> to vector<5x32xbf16>
    %c0_50 = arith.constant 0 : index
    %c0_51 = arith.constant 0 : index
    %c0_52 = arith.constant 0 : index
    %130 = vector.load %arg13[%c0_50, %c0_51, %c0_52] : memref<1x32x128xbf16, #tpu.memory_space<vmem>>, vector<1x32x128xbf16>
    %131 = vector.shape_cast %130 : vector<1x32x128xbf16> to vector<32x128xbf16>
    %cst_53 = arith.constant dense<0.000000e+00> : vector<5x128xf32>
    %132 = tpu.matmul %129, %131, %cst_53 {dimension_numbers = #tpu.dot_dimension_numbers<[1], [0], [0], [1], [0, 0, 1, 1], [], []>} : vector<5x32xbf16>, vector<32x128xbf16>, vector<5x128xf32> -> vector<5x128xf32>
    %c0_54 = arith.constant 0 : index
    %c0_55 = arith.constant 0 : index
    %c0_56 = arith.constant 0 : index
    %133 = vector.load %arg14[%c0_54, %c0_55, %c0_56] : memref<1x1x128xf32, #tpu.memory_space<vmem>>, vector<1x1x128xf32>
    %134 = vector.shape_cast %133 : vector<1x1x128xf32> to vector<1x128xf32>
    %135 = vector.broadcast %134 : vector<1x128xf32> to vector<5x128xf32>
    %136 = arith.addf %132, %135 : vector<5x128xf32>
    %cst_57 = arith.constant 0.000000e+00 : f32
    %137 = vector.broadcast %cst_57 : f32 to vector<5x128xf32>
    %138 = arith.maximumf %136, %137 : vector<5x128xf32>
    %139 = arith.truncf %138 : vector<5x128xf32> to vector<5x128xbf16>
    %c0_58 = arith.constant 0 : index
    %c0_59 = arith.constant 0 : index
    %c0_60 = arith.constant 0 : index
    %140 = vector.load %arg15[%c0_58, %c0_59, %c0_60] : memref<1x128x32xbf16, #tpu.memory_space<vmem>>, vector<1x128x32xbf16>
    %141 = vector.shape_cast %140 : vector<1x128x32xbf16> to vector<128x32xbf16>
    %cst_61 = arith.constant dense<0.000000e+00> : vector<5x32xf32>
    %142 = tpu.matmul %139, %141, %cst_61 {dimension_numbers = #tpu.dot_dimension_numbers<[1], [0], [0], [1], [0, 0, 1, 1], [], []>} : vector<5x128xbf16>, vector<128x32xbf16>, vector<5x32xf32> -> vector<5x32xf32>
    %c0_62 = arith.constant 0 : index
    %c0_63 = arith.constant 0 : index
    %c0_64 = arith.constant 0 : index
    %143 = vector.load %arg16[%c0_62, %c0_63, %c0_64] : memref<1x1x32xf32, #tpu.memory_space<vmem>>, vector<1x1x32xf32>
    %144 = vector.shape_cast %143 : vector<1x1x32xf32> to vector<1x32xf32>
    %145 = vector.broadcast %144 : vector<1x32xf32> to vector<5x32xf32>
    %146 = arith.addf %142, %145 : vector<5x32xf32>
    %147 = arith.addf %128, %146 : vector<5x32xf32>
    %cst_65 = arith.constant dense<0.000000e+00> : vector<5xf32>
    %148 = vector.multi_reduction <add>, %147, %cst_65 [1] : vector<5x32xf32> to vector<5xf32>
    %149 = vector.shape_cast %148 : vector<5xf32> to vector<5x1xf32>
    %cst_66 = arith.constant 3.200000e+01 : f32
    %150 = vector.broadcast %cst_66 : f32 to vector<5x1xf32>
    %151 = arith.divf %149, %150 : vector<5x1xf32>
    %152 = vector.broadcast %151 : vector<5x1xf32> to vector<5x32xf32>
    %153 = arith.subf %147, %152 : vector<5x32xf32>
    %154 = arith.mulf %153, %153 : vector<5x32xf32>
    %cst_67 = arith.constant dense<0.000000e+00> : vector<5xf32>
    %155 = vector.multi_reduction <add>, %154, %cst_67 [1] : vector<5x32xf32> to vector<5xf32>
    %156 = vector.shape_cast %155 : vector<5xf32> to vector<5x1xf32>
    %cst_68 = arith.constant 3.200000e+01 : f32
    %157 = vector.broadcast %cst_68 : f32 to vector<5x1xf32>
    %158 = arith.divf %156, %157 : vector<5x1xf32>
    %159 = vector.broadcast %151 : vector<5x1xf32> to vector<5x32xf32>
    %160 = arith.subf %147, %159 : vector<5x32xf32>
    %cst_69 = arith.constant 9.99999974E-6 : f32
    %161 = vector.broadcast %cst_69 : f32 to vector<5x1xf32>
    %162 = arith.addf %158, %161 : vector<5x1xf32>
    %163 = math.rsqrt %162 : vector<5x1xf32>
    %164 = vector.broadcast %163 : vector<5x1xf32> to vector<5x32xf32>
    %165 = arith.mulf %160, %164 : vector<5x32xf32>
    %c0_70 = arith.constant 0 : index
    %c0_71 = arith.constant 0 : index
    %c0_72 = arith.constant 0 : index
    %166 = vector.load %arg17[%c0_70, %c0_71, %c0_72] : memref<1x1x32xf32, #tpu.memory_space<vmem>>, vector<1x1x32xf32>
    %167 = vector.shape_cast %166 : vector<1x1x32xf32> to vector<1x32xf32>
    %168 = vector.broadcast %167 : vector<1x32xf32> to vector<5x32xf32>
    %169 = arith.mulf %165, %168 : vector<5x32xf32>
    %c0_73 = arith.constant 0 : index
    %c0_74 = arith.constant 0 : index
    %c0_75 = arith.constant 0 : index
    %170 = vector.load %arg18[%c0_73, %c0_74, %c0_75] : memref<1x1x32xf32, #tpu.memory_space<vmem>>, vector<1x1x32xf32>
    %171 = vector.shape_cast %170 : vector<1x1x32xf32> to vector<1x32xf32>
    %172 = vector.broadcast %171 : vector<1x32xf32> to vector<5x32xf32>
    %173 = arith.addf %169, %172 : vector<5x32xf32>
    %c0_76 = arith.constant 0 : index
    %c0_77 = arith.constant 0 : index
    %c0_78 = arith.constant 0 : index
    %174 = vector.load %arg19[%c0_76, %c0_77, %c0_78] : memref<1x5x32xf32, #tpu.memory_space<vmem>>, vector<1x5x32xf32>
    %175 = vector.shape_cast %174 : vector<1x5x32xf32> to vector<5x32xf32>
    %176 = vector.shape_cast %173 : vector<5x32xf32> to vector<1x5x32xf32>
    tpu.vector_store %arg19[%c0_76, %c0_77, %c0_78], %176 {strides = array<i32>} : memref<1x5x32xf32, #tpu.memory_space<vmem>>, vector<1x5x32xf32>,
    return
  }
  func.func @transform_0(%arg0: i32, %arg1: i32) -> (i32, i32, i32) {
    %c0_i32 = arith.constant 0 : i32
    %c0_i32_0 = arith.constant 0 : i32
    %c0_i32_1 = arith.constant 0 : i32
    return %arg0, %c0_i32, %c0_i32_0 : i32, i32, i32
  }
  func.func @transform_1(%arg0: i32, %arg1: i32) -> (i32, i32) {
    %c0_i32 = arith.constant 0 : i32
    %c0_i32_0 = arith.constant 0 : i32
    %c0_i32_1 = arith.constant 0 : i32
    return %c0_i32, %c0_i32_0 : i32, i32
  }
  func.func @transform_2(%arg0: i32, %arg1: i32) -> (i32, i32) {
    %c0_i32 = arith.constant 0 : i32
    %c0_i32_0 = arith.constant 0 : i32
    %c0_i32_1 = arith.constant 0 : i32
    return %c0_i32, %c0_i32_0 : i32, i32
  }
  func.func @transform_3(%arg0: i32, %arg1: i32) -> (i32, i32) {
    %c0_i32 = arith.constant 0 : i32
    %c0_i32_0 = arith.constant 0 : i32
    %c0_i32_1 = arith.constant 0 : i32
    return %c0_i32, %c0_i32_0 : i32, i32
  }
  func.func @transform_4(%arg0: i32, %arg1: i32) -> (i32, i32, i32) {
    %c0_i32 = arith.constant 0 : i32
    %c0_i32_0 = arith.constant 0 : i32
    %c0_i32_1 = arith.constant 0 : i32
    %c0_i32_2 = arith.constant 0 : i32
    return %c0_i32, %c0_i32_0, %c0_i32_1 : i32, i32, i32
  }
  func.func @transform_5(%arg0: i32, %arg1: i32) -> (i32, i32, i32) {
    %c0_i32 = arith.constant 0 : i32
    %c0_i32_0 = arith.constant 0 : i32
    %c0_i32_1 = arith.constant 0 : i32
    return %arg1, %c0_i32, %c0_i32_0 : i32, i32, i32
  }
  func.func @transform_6(%arg0: i32, %arg1: i32) -> (i32, i32, i32) {
    %c0_i32 = arith.constant 0 : i32
    %c0_i32_0 = arith.constant 0 : i32
    %c0_i32_1 = arith.constant 0 : i32
    return %arg1, %c0_i32, %c0_i32_0 : i32, i32, i32
  }
  func.func @transform_7(%arg0: i32, %arg1: i32) -> (i32, i32, i32) {
    %c0_i32 = arith.constant 0 : i32
    %c0_i32_0 = arith.constant 0 : i32
    %c0_i32_1 = arith.constant 0 : i32
    return %arg1, %c0_i32, %c0_i32_0 : i32, i32, i32
  }
  func.func @transform_8(%arg0: i32, %arg1: i32) -> (i32, i32, i32) {
    %c0_i32 = arith.constant 0 : i32
    %c0_i32_0 = arith.constant 0 : i32
    %c0_i32_1 = arith.constant 0 : i32
    return %arg1, %c0_i32, %c0_i32_0 : i32, i32, i32
  }
  func.func @transform_9(%arg0: i32, %arg1: i32) -> (i32, i32, i32) {
    %c0_i32 = arith.constant 0 : i32
    %c0_i32_0 = arith.constant 0 : i32
    %c0_i32_1 = arith.constant 0 : i32
    return %arg1, %c0_i32, %c0_i32_0 : i32, i32, i32
  }
  func.func @transform_10(%arg0: i32, %arg1: i32) -> (i32, i32, i32) {
    %c0_i32 = arith.constant 0 : i32
    %c0_i32_0 = arith.constant 0 : i32
    %c0_i32_1 = arith.constant 0 : i32
    return %arg1, %c0_i32, %c0_i32_0 : i32, i32, i32
  }
  func.func @transform_11(%arg0: i32, %arg1: i32) -> (i32, i32, i32) {
    %c0_i32 = arith.constant 0 : i32
    %c0_i32_0 = arith.constant 0 : i32
    %c0_i32_1 = arith.constant 0 : i32
    return %arg1, %c0_i32, %c0_i32_0 : i32, i32, i32
  }
  func.func @transform_12(%arg0: i32, %arg1: i32) -> (i32, i32, i32) {
    %c0_i32 = arith.constant 0 : i32
    %c0_i32_0 = arith.constant 0 : i32
    %c0_i32_1 = arith.constant 0 : i32
    return %arg1, %c0_i32, %c0_i32_0 : i32, i32, i32
  }
  func.func @transform_13(%arg0: i32, %arg1: i32) -> (i32, i32, i32) {
    %c0_i32 = arith.constant 0 : i32
    %c0_i32_0 = arith.constant 0 : i32
    %c0_i32_1 = arith.constant 0 : i32
    return %arg1, %c0_i32, %c0_i32_0 : i32, i32, i32
  }
  func.func @transform_14(%arg0: i32, %arg1: i32) -> (i32, i32, i32) {
    %c0_i32 = arith.constant 0 : i32
    %c0_i32_0 = arith.constant 0 : i32
    %c0_i32_1 = arith.constant 0 : i32
    return %arg1, %c0_i32, %c0_i32_0 : i32, i32, i32
  }
  func.func @transform_15(%arg0: i32, %arg1: i32) -> (i32, i32, i32) {
    %c0_i32 = arith.constant 0 : i32
    %c0_i32_0 = arith.constant 0 : i32
    %c0_i32_1 = arith.constant 0 : i32
    return %arg1, %c0_i32, %c0_i32_0 : i32, i32, i32
  }
  func.func @transform_16(%arg0: i32, %arg1: i32) -> (i32, i32, i32) {
    %c0_i32 = arith.constant 0 : i32
    %c0_i32_0 = arith.constant 0 : i32
    %c0_i32_1 = arith.constant 0 : i32
    return %arg1, %c0_i32, %c0_i32_0 : i32, i32, i32
  }
  func.func @transform_17(%arg0: i32, %arg1: i32) -> (i32, i32, i32) {
    %c0_i32 = arith.constant 0 : i32
    %c0_i32_0 = arith.constant 0 : i32
    %c0_i32_1 = arith.constant 0 : i32
    return %arg0, %c0_i32, %c0_i32_0 : i32, i32, i32
  }
}

</mosaic_0001>

<bundles_post_ra>
// kernel: vit_forward.1
= control target key start
LH: loop header
LB: loop body
LE: loop exit
PB: predicated region body
PF: predicated region fallthrough
CT: control target
= control target key end

     0   :  { %s2151_s24 = smov 0   ;;  %s2153_s25 = smov 0   ;;  %s2440_s0 = inlined_call_operand.vmem [shape: f32[2,4,256], index: 0, kind: input, shape index: {}]   ;;  %s2441_s1 = inlined_call_operand.vmem [shape: bf16[256,32], index: 1, kind: input, shape index: {}]   ;;  %s2442_s2 = inlined_call_operand.vmem [shape: f32[1,32], index: 2, kind: input, shape index: {}]   ;;  %s2443_s3 = inlined_call_operand.vmem [shape: f32[1,32], index: 3, kind: input, shape index: {}]   ;;  %s2444_s4 = inlined_call_operand.vmem [shape: f32[1,5,32], index: 4, kind: input, shape index: {}]   ;;  %s2445_s5 = inlined_call_operand.vmem [shape: bf16[2,32,96], index: 5, kind: input, shape index: {}]   ;;  %s2446_s6 = inlined_call_operand.vmem [shape: f32[2,1,96], index: 6, kind: input, shape index: {}]   ;;  %s2447_s7 = inlined_call_operand.vmem [shape: bf16[2,32,32], index: 7, kind: input, shape index: {}]   ;;  %s2448_s8 = inlined_call_operand.vmem [shape: f32[2,1,32], index: 8, kind: input, shape index: {}]   ;;  %s2449_s9 = inlined_call_operand.vmem [shape: f32[2,1,32], index: 9, kind: input, shape index: {}]   ;;  %s2450_s10 = inlined_call_operand.vmem [shape: f32[2,1,32], index: 10, kind: input, shape index: {}]   ;;  %s2451_s11 = inlined_call_operand.vmem [shape: bf16[2,32,128], index: 11, kind: input, shape index: {}]   ;;  %s2452_s12 = inlined_call_operand.vmem [shape: f32[2,1,128], index: 12, kind: input, shape index: {}]   ;;  %s2453_s13 = inlined_call_operand.vmem [shape: bf16[2,128,32], index: 13, kind: input, shape index: {}]   ;;  %s2454_s14 = inlined_call_operand.vmem [shape: f32[2,1,32], index: 14, kind: input, shape index: {}]   ;;  %s2455_s15 = inlined_call_operand.vmem [shape: f32[2,1,32], index: 15, kind: input, shape index: {}]   ;;  %s2456_s16 = inlined_call_operand.vmem [shape: f32[2,1,32], index: 16, kind: input, shape index: {}]   ;;  %s2457_s17 = inlined_call_operand.vmem [shape: f32[2,5,32], index: 17, kind: output, shape index: {}]  }
   0x1   :  { %2464 = sst [smem:[#allocation9_spill]] %s2440_s0  ;;  %s2155_s26 = smov 0  }
   0x2   :  { %2465 = sst [smem:[#allocation10_spill]] %s2441_s1  ;;  %s2157_s27 = smov 0  }
   0x3   :  { %2466 = sst [smem:[#allocation11_spill]] %s2442_s2  ;;  %s2159_s28 = smov 0  }
   0x4   :  { %2467 = sst [smem:[#allocation12_spill]] %s2443_s3 }
   0x5   :  { %2468 = sst [smem:[#allocation13_spill]] %s2444_s4 }
   0x6   :  { %2469 = sst [smem:[#allocation14_spill]] %s2445_s5 }
   0x7   :  { %2470 = sst [smem:[#allocation15_spill]] %s2447_s7 }
   0x8   :  { %2471 = sst [smem:[#allocation16_spill]] %s2451_s11 }
   0x9   :  { %2472 = sst [smem:[#allocation17_spill]] %s2457_s17 }
   0xa LB: > { %2473 = sst [smem:[#allocation2_spill]] %s2031_s24  ;;  %s36_s29 = sadd.s32 1, %s2039_s26  ;;  %s2047_s28 = sphi %s2159_s28, %s27_s28   ;;  %s2043_s27 = sphi %s2157_s27, %s2501_s27   ;;  %s2039_s26 = sphi %s2155_s26, %s2500_s26   ;;  %s2035_s25 = sphi %s2153_s25, %s2499_s25   ;;  %s2031_s24 = sphi %s2151_s24, %s2498_s24  }
   0xb   : > { %2474 = sst [smem:[#allocation3_spill]] %s2039_s26  ;;  %s39_s0 = sadd.s32 1, %s2043_s27 }
   0xc   : > { %2475 = sst [smem:[#allocation4_spill]] %s2043_s27  ;;  %p37_p0 = scmp.ge.s32.totalorder %s36_s29, 2 }
   0xd   : > { %2476 = sst [smem:[#allocation5_spill]] %s2047_s28  ;;  %p1735_p1 = scmp.ge.s32.totalorder %s2047_s28, 1 }
   0xe   : > { %p603_p2 = scmp.lt.s32.totalorder %s2047_s28, 5  ;;  %s2503_s29 = smov (%p37_p0, %s36_s29), 0 }
   0xf   : > { %2477 = sst [smem:[#allocation6_spill]] %s2503_s29  ;;  %s2505_s0 = smov (!%p37_p0, %s39_s0), %s2043_s27 }
  0x10   : > { %p604_p3 = pnand %p1735_p1, %p603_p2  ;;  %p41_p4 = scmp.ge.s32.totalorder %s2505_s0, 2 }
  0x12   : > { %s2507_s0 = smov (%p41_p4, %s2505_s0), 0  ;;  %607 = sbr.rel (%p604_p3) target bundleno = 2472 (0x9a8), region = 88 }
  0x13   : > { %2478 = sst [smem:[#allocation7_spill]] %s2507_s0 }
  0x17   : > { %p698_p5 = scmp.lt.s32.totalorder %s2035_s25, 1  ;;  %p703_p6 = scmp.lt.s32.totalorder %s2031_s24, 1 }
  0x18   : > { %s2479_s20 = sld [smem:[#allocation9_spill]] }
  0x19   : > { %s2509_s25 = smov (!%p698_p5, %s2035_s25), 1  ;;  %s2480_s5 = sld [smem:[#allocation14_spill]] }
  0x1a   : > { %s2185_s30 = scalar_select %p703_p6, %s2031_s24, 1 }
  0x1b   : > { %s1884_s18 = sshll.u32 %s2509_s25, 3  ;;  %s2482_s7 = sld [smem:[#allocation15_spill]] }
  0x1c   : > { %s1885_s22 = sshll.u32 %s2185_s30, 4  ;;  %s2483_s11 = sld [smem:[#allocation16_spill]] }
  0x1d   : > { %s2484_s28 = sld [smem:[#allocation17_spill]] }
  0x1e   : > { %s702_s21 = scalar_lea.vmem %s2479_s20, %s1884_s18  ;;  %s2485_s24 = sld [smem:[#allocation2_spill]] }
  0x1f   : > { %s2194_s29 = scalar_lea.vmem %s2480_s5, %s1885_s22  ;;  %s746_s5 = scalar_lea.vmem %s2456_s16, %s2185_s30 }
  0x20   : > { %2481 = sst [smem:[#allocation8_spill]] %s2194_s29  ;;  %s743_s29 = scalar_lea.vmem %s2455_s15, %s2185_s30 }
  0x21   : > { %s2203_s4 = scalar_lea.vmem %s2482_s7, %s1885_s22  ;;  %s1888_s7 = sshll.u32 %s2185_s30, 6 }
  0x22   : > { %s2220_s27 = scalar_lea.vmem %s2483_s11, %s1885_s22  ;;  %s2234_s17 = scalar_lea.vmem %s2453_s13, %s1888_s7 }
  0x23   : > { %s2247_s11 = scalar_lea.vmem %s2484_s28, %s1884_s18 }
  0x24   : > { %p1747_p7 = scmp.ne.s32.totalorder %s2485_s24, 0 }
  0x25   : > { %s2486_s7 = sld [smem:[#allocation10_spill]] (!%p1747_p7) }
  0x26   : > { %755 = sbr.rel (%p1747_p7) target bundleno = 210 (0xd2), region = 92  ;;  %s2487_s22 = sld [smem:[#allocation13_spill]] (!%p1747_p7) }
  0x27   : > { %s2488_s26 = sld [smem:[#allocation12_spill]] (!%p1747_p7) }
  0x28   : > { %s2489_s3 = sld [smem:[#allocation11_spill]] (!%p1747_p7) }
  0x2b   : > { %v1896_v0 = vld [vmem:[%s2486_s7 + $0x38] sm:$0xff]  ;;  %v1895_v2 = vld [vmem:[%s2486_s7 + $0x30] sm:$0xff]  ;;  %v756_v4 = vld [vmem:[%s702_s21] sm:$0xff]  ;;  %vm926_vm0 = vcmask 253952   ;;  %vm932_vm1 = vcmask 257024  }
  0x2c   : > { %v1904_v1 = vld [vmem:[%s2486_s7 + $0x78] sm:$0xff]  ;;  %897 = vmatpush.bf16.msra.mxu0 %v1896_v0  ;;  %v1903_v3 = vld [vmem:[%s2486_s7 + $0x70] sm:$0xff]  ;;  %v1894_v5 = vld [vmem:[%s2486_s7 + $0x28] sm:$0xff]  ;;  %758 = vst [vmem:[#allocation1] ss:$2 sm:$0xff] %v756_v4 }
  0x2d   : > { %910 = vmatpush.bf16.msra.mxu1 %v1904_v1  ;;  %v1902_v6 = vld [vmem:[%s2486_s7 + $0x68] sm:$0xff]  ;;  %v1893_v7 = vld [vmem:[%s2486_s7 + $0x20] sm:$0xff]  ;;  %v1892_v9 = vld [vmem:[%s2486_s7 + $0x18] sm:$0xff] }
  0x2e   : > { %v1901_v8 = vld [vmem:[%s2486_s7 + $0x60] sm:$0xff]  ;;  %v1900_v10 = vld [vmem:[%s2486_s7 + $0x58] sm:$0xff]  ;;  %v1891_v11 = vld [vmem:[%s2486_s7 + $0x10] sm:$0xff] }
  0x2f   : > { %v1899_v12 = vld [vmem:[%s2486_s7 + $0x50] sm:$0xff]  ;;  %v1890_v13 = vld [vmem:[%s2486_s7 + $0x8] sm:$0xff]  ;;  %v1889_v15 = vld [vmem:[%s2486_s7] sm:$0xff] }
  0x30   : > { %898 = vmatpush.bf16.msra.mxu0 %v1895_v2  ;;  %v1898_v14 = vld [vmem:[%s2486_s7 + $0x48] sm:$0xff]  ;;  %v1897_v16 = vld [vmem:[%s2486_s7 + $0x40] sm:$0xff] }
  0x31   : > { %911 = vmatpush.bf16.msra.mxu1 %v1903_v3  ;;  %v923_v21 = vld [vmem:[%s2487_s22] sm:$0x1f] }
  0x32   : > { %v924_v22 = vld [vmem:[%s2488_s26] sm:$0x1]  ;;  %v929_v28 = vrot.slane %v923_v21, 1 }
  0x33   : > { %v759_v17 = vld.sshfl [vmem:[#allocation1] sm:$0xff pattern:$0x75316420]  ;;  %v760_v18 = vld.sshfl [vmem:[#allocation1 + $0x8] sm:$0xff pattern:$0x75316420]  ;;  %v925_v23 = vadd.f32 %v924_v22, %v923_v21 }
  0x34   : > { %899 = vmatpush.bf16.msra.mxu0 %v1894_v5  ;;  %v763_v19 = vpack.c.bf16 %v759_v17, %v759_v17  ;;  %v764_v20 = vpack.c.bf16 %v760_v18, %v760_v18  ;;  %v1978_v24 = vld [vmem:[%s2489_s3] ss:$0 sm:$0xff] }
  0x35   : > { %912 = vmatpush.bf16.msra.mxu1 %v1902_v6  ;;  %927 = vst.msk [vmem:[%s2247_s11] sm:$0x1] %vm926_vm0, %v925_v23 }
  0x38   : > { %900 = vmatpush.bf16.msra.mxu0 %v1893_v7 }
  0x39   : > { %913 = vmatpush.bf16.msra.mxu1 %v1901_v8 }
  0x3c   : > { %901 = vmatpush.bf16.msra.mxu0 %v1892_v9 }
  0x3d   : > { %914 = vmatpush.bf16.msra.mxu1 %v1900_v10 }
  0x40   : > { %902 = vmatpush.bf16.msra.mxu0 %v1891_v11 }
  0x41   : > { %915 = vmatpush.bf16.msra.mxu1 %v1899_v12 }
  0x44   : > { %903 = vmatpush.bf16.msra.mxu0 %v1890_v13 }
  0x45   : > { %916 = vmatpush.bf16.msra.mxu1 %v1898_v14 }
  0x48   : > { %904 = vmatpush.bf16.msra.mxu0 %v1889_v15 }
  0x49   : > { %917 = vmatpush.bf16.msra.mxu1 %v1897_v16 }
  0x4b   : > { %905 = vmatmul.bf16.vlgmr.msra.gmra.mxu0 %v763_v19 }
  0x4c   : > { %918 = vmatmul.bf16.vlgmr.msra.gmra.mxu1 %v764_v20 }
  0xc8   : > { %v906_v25 = vpop.f32.mrf.mxu0 }
  0xc9   : > { %v919_v26 = vpop.f32.mrf.mxu1  ;;  %v907_v27 = vadd.f32 %v1978_v24, %v906_v25 }
  0xcb   : > { %v920_v29 = vadd.f32 %v919_v26, %v907_v27 }
  0xcd   : > { %v931_v30 = vadd.f32 %v929_v28, %v920_v29 }
  0xcf   : > { %933 = vst.msk [vmem:[%s2247_s11 + $0x1] sm:$0xf] %vm932_vm1, %v931_v30 }
  0xd0   : > { %v908_v31 = vpop.f32.mrf.mxu0 }
  0xd1   : > { %v921_v32 = vpop.f32.mrf.mxu1 }
  0xd2 PF: > { %s2490_s24 = sld [smem:[#allocation8_spill]]  ;;  %vm956_vm2 = vcmask 261120   ;;  %s2491_s21 = scalar_lea.vmem %s2446_s6, %s2185_s30  ;;  %vm985_vm3 = vcmask 64512   ;;  %vm1029_vm4 = vcmask 1044480   ;;  %vm1011_vm5 = vcmask 36864   ;;  %v1918_v7 = vld [vmem:[%s2203_s4] sm:$0xff]  }
  0xd3   : > { %v1979_v37 = vld [vmem:[%s2491_s21] ss:$0 sm:$0xff]  ;;  %s2049_s20 = smov 112   ;;  %s2050_s0 = smov 120   ;;  %v1919_v8 = vunpack.c.l.bf16 %v1918_v7  ;;  %vm1025_vm6 = vcmask 39936   ;;  %v1920_v24 = vunpack.c.h.bf16 %v1918_v7  ;;  %v1925_v25 = vld [vmem:[%s2203_s4 + $0x8] sm:$0xff]  }
  0xd4   : > { %s2051_s23 = smov 96   ;;  %s2052_s22 = smov 80   ;;  %v1923_v26 = vunpack.c.l.bf16 %v1925_v25  ;;  %vm1353_vm7 = vcmask 258048  }
  0xd5   : > { %s2053_s28 = smov 88   ;;  %s2054_s18 = smov 64  }
  0xd6   : > { %v2312_v35 = vld [vmem:[%s2247_s11] sm:$0x1f]  ;;  %s2055_s26 = smov 72   ;;  %s2056_s2 = smov 48  }
  0xd7   : > { %v935_v36 = vpack.c.bf16 %v2312_v35, %v2312_v35  ;;  %s2057_s19 = smov 56   ;;  %s2058_s3 = smov 104  }
  0xd8   : > { %v1906_v33 = vld [vmem:[%s2490_s24 + $0x8] sm:$0xff]  ;;  %v1905_v34 = vld [vmem:[%s2490_s24] sm:$0xff]  ;;  %s2059_s24 = smov 40   ;;  %s2492_s1 = scalar_lea.vmem %s2448_s8, %s2185_s30 }
  0xd9   : > { %966 = vmatpush.bf16.msra.mxu2 %v1906_v33 }
  0xdd   : > { %967 = vmatpush.bf16.msra.mxu2 %v1905_v34 }
  0xe0   : > { %1820 = vmatmul.msk.bf16.vlgmr.msra.gmra.mxu2 %vm956_vm2, %v935_v36 }
 0x163   : > { %v969_v38 = vpop.f32.mrf.mxu2 }
 0x164   : > { %v2322_v39 = vadd.f32 %v1979_v37, %v969_v38 }
 0x166   : > { %1170 = vrot.lane.b32.xlu2 %v2322_v39, %s2049_s20  ;;  %1079 = vrot.lane.b32.xlu1 %v2322_v39, %s2050_s0  ;;  %s2493_s20 = scalar_lea.vmem %s2449_s9, %s2185_s30 }
 0x167   : > { %983 = vrot.lane.b32.xlu0 %v2322_v39, %s2051_s23 }
 0x16b   : > { %v971_v40 = vpop.f32.mrf.mxu2 }
 0x16e   : > { %1172 = vrot.lane.b32.xlu1 %v2322_v39, %s2052_s22  ;;  %s2494_s22 = scalar_lea.vmem %s2450_s10, %s2185_s30 }
 0x16f   : > { %1081 = vrot.lane.b32.xlu0 %v2322_v39, %s2053_s28 }
 0x176   : > { %1023 = vrot.lane.b32.xlu1 %v2322_v39, %s2054_s18 }
 0x1c0   : > { %v1171_v46 = vpop.permute.xlu2 %1170 }
 0x1d8   : > { %v1080_v41 = vpop.permute.xlu1 %1079 }
 0x1d9   : > { %v984_v42 = vpop.permute.xlu0 %983 }
 0x1da   : > { %1821 = vmatpush.xpose.msk.msra.mxu1 %vm985_vm3, %v984_v42 }
 0x1dd   : > { %1822 = vmatmul.msk.f32.vlgmr.msra.gmra.mxu1 %vm985_vm3, %v2322_v39 }
 0x1de   : > { %1164 = vmatpush.msrb.mxu1 %v1920_v24 }
 0x1e0   : > { %v1173_v43 = vpop.permute.xlu1 %1172  ;;  %1255 = vmatpush.msra.mxu1 %v1923_v26  ;;  %v1909_v26 = vld [vmem:[%s2234_s17] sm:$0xff] }
 0x1e1   : > { %v1082_v44 = vpop.permute.xlu0 %1081 }
 0x1e2   : > { %1826 = vmatpush.xpose.msk.msrb.mxu2 %vm985_vm3, %v1082_v44 }
 0x1e5   : > { %1827 = vmatmul.msk.f32.vlgmr.msrb.gmra.mxu2 %vm985_vm3, %v1080_v41 }
 0x1e6   : > { %1831 = vmatpush.xpose.msk.msra.mxu2 %vm985_vm3, %v1173_v43 }
 0x1e8   : > { %v1024_v45 = vpop.permute.xlu1 %1023 }
 0x1e9   : > { %1823 = vmatpush.msk.msra.mxu3 %vm1029_vm4, %v1024_v45  ;;  %v1980_v45 = vld [vmem:[%s2492_s1] ss:$0 sm:$0xff] }
 0x1eb   : > { %1070 = vmatpush.msrb.mxu3 %v1919_v8  ;;  %v1914_v8 = vld [vmem:[%s2234_s17 + $0x28] sm:$0xff] }
 0x1ed   : > { %1832 = vmatmul.msk.f32.vlgmr.msra.gmra.mxu2 %vm985_vm3, %v1171_v46 }
 0x25a   : > { %v1007_v47 = vpop.f32.mrf.mxu1 }
 0x25b   : > { %v1010_v48 = vmul.f32 0.35355338, %v1007_v47 }
 0x25d   : > { %v1012_v49 = vsel %vm1011_vm5, %v1010_v48, -inf }
 0x25e   : > { %1013 = vmax.xlane.f32.xlu2 %v1012_v49 }
 0x268   : > { %v1104_v50 = vpop.f32.mrf.mxu2 }
 0x269   : > { %v1107_v51 = vmul.f32 0.35355338, %v1104_v50 }
 0x26b   : > { %v1108_v52 = vsel %vm1011_vm5, %v1107_v51, -inf }
 0x26c   : > { %1109 = vmax.xlane.f32.xlu1 %v1108_v52 }
 0x270   : > { %v1195_v53 = vpop.f32.mrf.mxu2 }
 0x271   : > { %v1198_v54 = vmul.f32 0.35355338, %v1195_v53 }
 0x273   : > { %v1199_v55 = vsel %vm1011_vm5, %v1198_v54, -inf }
 0x274   : > { %1200 = vmax.xlane.f32.xlu2 %v1199_v55 }
 0x285   : > { %1263 = vrot.lane.b32.xlu1 %v2322_v39, %s2055_s26  ;;  %s2495_s26 = scalar_lea.vmem %s2452_s12, %s2185_s30 }
 0x2d1   : > { %v1014_v56 = vpop.xlane.xlu2 %1013 }
 0x2d2   : > { %v1015_v57 = vsub.f32 %v1010_v48, %v1014_v56 }
 0x2d4   : > { %v1016_v58 = vmul.f32 1.442695, %v1015_v57 }
 0x2d6   : > { %1987 = vpow2.f32 %v1016_v58 }
 0x2dc   : > { %v1988_v59 = vpop.eup %1987 }
 0x2dd   : > { %v1018_v60 = vsel %vm1011_vm5, %v1988_v59, 0.0 }
 0x2de   : > { %1019 = vadd.xlane.f32.xlu0 %v1018_v60 }
 0x2df   : > { %v1110_v61 = vpop.xlane.xlu1 %1109 }
 0x2e0   : > { %v1111_v62 = vsub.f32 %v1107_v51, %v1110_v61 }
 0x2e2   : > { %v1112_v63 = vmul.f32 1.442695, %v1111_v62 }
 0x2e4   : > { %1989 = vpow2.f32 %v1112_v63 }
 0x2e7   : > { %v1201_v2 = vpop.xlane.xlu2 %1200 }
 0x2e8   : > { %v1202_v3 = vsub.f32 %v1198_v54, %v1201_v2  ;;  %v2060_v54 = vmov 32.0   ;;  %v1907_v2 = vld [vmem:[%s2220_s27] sm:$0xff] }
 0x2ea   : > { %v1990_v0 = vpop.eup %1989  ;;  %v1203_v4 = vmul.f32 1.442695, %v1202_v3  ;;  %v1916_v3 = vld [vmem:[%s2234_s17 + $0x38] sm:$0xff] }
 0x2eb   : > { %v1114_v1 = vsel %vm1011_vm5, %v1990_v0, 0.0  ;;  %1500 = vmatpush.bf16.msra.mxu0 %v1916_v3 }
 0x2ec   : > { %1115 = vadd.xlane.f32.xlu2 %v1114_v1  ;;  %1991 = vpow2.f32 %v1203_v4  ;;  %v1908_v1 = vld [vmem:[%s2220_s27 + $0x8] sm:$0xff] }
 0x2f2   : > { %1210 = vrot.lane.b32.xlu0 %v2322_v39, %s2056_s2  ;;  %v1992_v5 = vpop.eup %1991 }
 0x2f3   : > { %v1205_v6 = vsel %vm1011_vm5, %v1992_v5, 0.0 }
 0x2f7   : > { %v1264_v21 = vpop.permute.xlu1 %1263 }
 0x304   : > { %1119 = vrot.lane.b32.xlu2 %v2322_v39, %s2057_s19 }
 0x31c   : > { %1206 = vadd.xlane.f32.xlu0 %v1205_v6  ;;  %v1915_v6 = vld [vmem:[%s2234_s17 + $0x30] sm:$0xff] }
 0x31d   : > { %1501 = vmatpush.bf16.msra.mxu0 %v1915_v6 }
 0x321   : > { %1502 = vmatpush.bf16.msra.mxu0 %v1914_v8 }
 0x330   : > { %1261 = vrot.lane.b32.xlu0 %v2322_v39, %s2058_s3  ;;  %s2496_s3 = scalar_lea.vmem %s2454_s14, %s2185_s30 }
 0x338   : > { %1301 = vrot.lane.b32.xlu0 %v2322_v39, %s2059_s24  ;;  %v1924_v39 = vunpack.c.h.bf16 %v1925_v25  ;;  %v1910_v25 = vld [vmem:[%s2234_s17 + $0x8] sm:$0xff] }
 0x351   : > { %v1020_v9 = vpop.xlane.xlu0 %1019 }
 0x352   : > { %1993 = vrcp.f32 %v1020_v9  ;;  %v1913_v9 = vld [vmem:[%s2234_s17 + $0x20] sm:$0xff] }
 0x353   : > { %1503 = vmatpush.bf16.msra.mxu0 %v1913_v9 }
 0x358   : > { %v1994_v10 = vpop.eup %1993 }
 0x359   : > { %v1022_v11 = vmul.f32 %v1994_v10, %v1988_v59 }
 0x35b   : > { %1824 = vmatmul.msk.f32.vlgmr.msra.gmra.mxu3 %vm1025_vm6, %v1022_v11 }
 0x35f   : > { %v1116_v12 = vpop.xlane.xlu2 %1115 }
 0x360   : > { %1995 = vrcp.f32 %v1116_v12  ;;  %v1912_v12 = vld [vmem:[%s2234_s17 + $0x18] sm:$0xff] }
 0x361   : > { %1504 = vmatpush.bf16.msra.mxu0 %v1912_v12 }
 0x364   : > { %v1211_v14 = vpop.permute.xlu0 %1210 }
 0x366   : > { %v1996_v19 = vpop.eup %1995 }
 0x367   : > { %v1120_v13 = vpop.permute.xlu2 %1119  ;;  %v1118_v20 = vmul.f32 %v1996_v19, %v1990_v0 }
 0x368   : > { %1828 = vmatpush.msk.msra.mxu3 %vm1029_vm4, %v1120_v13 }
 0x38f   : > { %v1207_v15 = vpop.xlane.xlu0 %1206 }
 0x390   : > { %1997 = vrcp.f32 %v1207_v15  ;;  %v1911_v15 = vld [vmem:[%s2234_s17 + $0x10] sm:$0xff] }
 0x391   : > { %1505 = vmatpush.bf16.msra.mxu0 %v1911_v15 }
 0x395   : > { %1506 = vmatpush.bf16.msra.mxu0 %v1910_v25 }
 0x396   : > { %v1998_v22 = vpop.eup %1997 }
 0x397   : > { %v1209_v23 = vmul.f32 %v1998_v22, %v1992_v5 }
 0x399   : > { %1507 = vmatpush.bf16.msra.mxu0 %v1909_v26 }
 0x3a2   : > { %v1262_v16 = vpop.permute.xlu0 %1261 }
 0x3aa   : > { %v1302_v17 = vpop.permute.xlu0 %1301 }
 0x3ab   : > { %1838 = vmatpush.msk.msrb.mxu2 %vm1029_vm4, %v1302_v17 }
 0x3de   : > { %v1049_v18 = vpop.f32.mrf.mxu3 }
 0x3df   : > { %1825 = vmatmul.msk.f32.vlgmr.msrb.gmra.mxu3 %vm985_vm3, %v1049_v18  ;;  %v1981_v18 = vld [vmem:[%s2493_s20] ss:$0 sm:$0xff] }
 0x3e0   : > { %1833 = vmatpush.msk.msrb.mxu3 %vm1029_vm4, %v1211_v14 }
 0x3e7   : > { %1829 = vmatmul.msk.f32.vlgmr.msra.gmra.mxu3 %vm1025_vm6, %v1118_v20  ;;  %v1982_v20 = vld [vmem:[%s2494_s22] ss:$0 sm:$0xff] }
 0x3e8   : > { %1836 = vmatpush.xpose.msk.msra.mxu3 %vm985_vm3, %v1264_v21 }
 0x3ef   : > { %1834 = vmatmul.msk.f32.vlgmr.msrb.gmra.mxu3 %vm1025_vm6, %v1209_v23 }
 0x3f0   : > { %1346 = vmatpush.msrb.mxu3 %v1924_v39 }
 0x3f7   : > { %1837 = vmatmul.msk.f32.vlgmr.msra.gmra.mxu3 %vm985_vm3, %v1262_v16 }
 0x462   : > { %v1072_v27 = vpop.f32.mrf.mxu3 }
 0x463   : > { %v1078_v46 = vadd.f32 %v1980_v45, %v1072_v27  ;;  %v1983_v27 = vld [vmem:[%s2495_s26] ss:$0 sm:$0xff] }
 0x46a   : > { %v1143_v28 = vpop.f32.mrf.mxu3 }
 0x46b   : > { %1830 = vmatmul.msk.f32.vlgmr.msrb.gmra.mxu1 %vm985_vm3, %v1143_v28 }
 0x46c   : > { %1423 = vmatpush.bf16.msrb.mxu1 %v1908_v1 }
 0x470   : > { %1424 = vmatpush.bf16.msrb.mxu1 %v1907_v2 }
 0x472   : > { %v1234_v29 = vpop.f32.mrf.mxu3 }
 0x473   : > { %1835 = vmatmul.msk.f32.vlgmr.msra.gmra.mxu1 %vm985_vm3, %v1234_v29 }
 0x47a   : > { %v1286_v30 = vpop.f32.mrf.mxu3 }
 0x47b   : > { %v1289_v31 = vmul.f32 0.35355338, %v1286_v30 }
 0x47d   : > { %v1290_v32 = vsel %vm1011_vm5, %v1289_v31, -inf }
 0x47e   : > { %1291 = vmax.xlane.f32.xlu2 %v1290_v32 }
 0x4e8   : > { %v1166_v44 = vpop.f32.mrf.mxu1 }
 0x4e9   : > { %v1169_v48 = vadd.f32 %v1166_v44, %v1078_v46 }
 0x4f0   : > { %v1257_v47 = vpop.f32.mrf.mxu1 }
 0x4f1   : > { %v1292_v33 = vpop.xlane.xlu2 %1291  ;;  %v1260_v49 = vadd.f32 %v1257_v47, %v1169_v48 }
 0x4f2   : > { %v1293_v34 = vsub.f32 %v1289_v31, %v1292_v33  ;;  %v1984_v33 = vld [vmem:[%s2496_s3] ss:$0 sm:$0xff] }
 0x4f4   : > { %v1294_v36 = vmul.f32 1.442695, %v1293_v34 }
 0x4f6   : > { %1999 = vpow2.f32 %v1294_v36 }
 0x4fc   : > { %v2000_v37 = vpop.eup %1999 }
 0x4fd   : > { %v1296_v38 = vsel %vm1011_vm5, %v2000_v37, 0.0 }
 0x4fe   : > { %1297 = vadd.xlane.f32.xlu1 %v1296_v38 }
 0x571   : > { %v1298_v40 = vpop.xlane.xlu1 %1297 }
 0x572   : > { %2001 = vrcp.f32 %v1298_v40 }
 0x573   : > { %2003 = vrcp.f32 %v2060_v54  ;;  %v1985_v54 = vld [vmem:[%s743_s29] ss:$0 sm:$0xff] }
 0x578   : > { %v2002_v41 = vpop.eup %2001 }
 0x579   : > { %v1300_v42 = vmul.f32 %v2002_v41, %v2000_v37  ;;  %v2004_v55 = vpop.eup %2003 }
 0x57a   : > { %v1358_v56 = vmul.f32 32.0, %v2004_v55  ;;  %vm1362_vm8 = vweird.f32 %v2004_v55 }
 0x57b   : > { %1839 = vmatmul.msk.f32.vlgmr.msrb.gmra.mxu2 %vm1025_vm6, %v1300_v42 }
 0x57c   : > { %v1359_v57 = vsub.f32 1.0, %v1358_v56  ;;  %v1986_v56 = vld [vmem:[%s746_s5] ss:$0 sm:$0xff] }
 0x57e   : > { %v1360_v58 = vmul.f32 %v2004_v55, %v1359_v57 }
 0x580   : > { %v1361_v59 = vadd.f32 %v2004_v55, %v1360_v58 }
 0x582   : > { %v2373_v60 = vsel %vm1362_vm8, %v2004_v55, %v1361_v59 }
 0x5fe   : > { %v1325_v43 = vpop.f32.mrf.mxu2 }
 0x5ff   : > { %1840 = vmatmul.msk.f32.vlgmr.msrb.gmra.mxu3 %vm985_vm3, %v1325_v43 }
 0x682   : > { %v1348_v50 = vpop.f32.mrf.mxu3 }
 0x683   : > { %v1351_v51 = vadd.f32 %v1348_v50, %v1260_v49 }
 0x685   : > { %v1352_v52 = vadd.f32 %v1351_v51, %v2312_v35 }
 0x687   : > { %v1354_v53 = vsel %vm1353_vm7, %v1352_v52, 0.0 }
 0x688   : > { %1355 = vadd.xlane.f32.xlu0 %v1354_v53 }
 0x6fb   : > { %v1356_v61 = vpop.xlane.xlu0 %1355 }
 0x6fc   : > { %v1364_v35 = vmul.f32 %v2373_v60, %v1356_v61 }
 0x6fe   : > { %v1365_v62 = vsub.f32 %v1352_v52, %v1364_v35 }
 0x700   : > { %v1366_v63 = vmul.f32 %v1365_v62, %v1365_v62 }
 0x702   : > { %v1367_v0 = vsel %vm1353_vm7, %v1366_v63, 0.0 }
 0x703   : > { %1368 = vadd.xlane.f32.xlu2 %v1367_v0 }
 0x776   : > { %v1369_v4 = vpop.xlane.xlu2 %1368 }
 0x777   : > { %v1370_v5 = vmul.f32 %v1369_v4, %v2373_v60 }
 0x779   : > { %v1371_v7 = vadd.f32 1e-05, %v1370_v5 }
 0x77b   : > { %2005 = vrsqrt.f32 %v1371_v7  ;;  %vm1378_vm10 = vweird.f32 %v1371_v7 }
 0x781   : > { %v2006_v10 = vpop.eup %2005 }
 0x782   : > { %v1373_v11 = vmul.f32 %v2006_v10, %v1371_v7  ;;  %vm1379_vm9 = vweird.f32 %v2006_v10 }
 0x783   : > { %vm1380_vm11 = vmor %vm1378_vm10, %vm1379_vm9 }
 0x784   : > { %v1374_v13 = vmul.f32 %v2006_v10, %v1373_v11 }
 0x786   : > { %v1375_v14 = vmul.f32 0.5, %v1374_v13 }
 0x788   : > { %v1376_v16 = vsub.f32 1.5, %v1375_v14 }
 0x78a   : > { %v1377_v17 = vmul.f32 %v2006_v10, %v1376_v16 }
 0x78c   : > { %v1381_v19 = vsel %vm1380_vm11, %v2006_v10, %v1377_v17 }
 0x78d   : > { %v1382_v21 = vmul.f32 %v1381_v19, %v1365_v62 }
 0x78f   : > { %v1387_v22 = vmul.f32 %v1981_v18, %v1382_v21 }
 0x791   : > { %v1392_v23 = vadd.f32 %v1982_v20, %v1387_v22 }
 0x793   : > { %v1393_v24 = vpack.c.bf16 %v1392_v23, %v1392_v23 }
 0x795   : > { %1849 = vmatmul.msk.bf16.vlgmr.msrb.gmra.mxu1 %vm956_vm2, %v1393_v24 }
 0x812   : > { %v1426_v28 = vpop.f32.mrf.mxu1 }
 0x813   : > { %v1427_v29 = vadd.f32 %v1983_v27, %v1426_v28 }
 0x815   : > { %v1430_v30 = vmax.f32 %v1427_v29, 0.0 }
 0x817   : > { %v1431_v31 = vpack.c.bf16 %v1430_v30, %v1430_v30 }
 0x819   : > { %1508 = vmatmul.bf16.vlgmr.msra.gmra.mxu0 %v1431_v31 }
 0x81a   : > { %v1428_v32 = vpop.f32.mrf.mxu1 }
 0x896   : > { %v1509_v34 = vpop.f32.mrf.mxu0 }
 0x897   : > { %v1510_v36 = vadd.f32 %v1984_v33, %v1509_v34 }
 0x899   : > { %v1513_v37 = vadd.f32 %v1510_v36, %v1392_v23 }
 0x89b   : > { %v1514_v38 = vsel %vm1353_vm7, %v1513_v37, 0.0 }
 0x89c   : > { %1515 = vadd.xlane.f32.xlu1 %v1514_v38 }
 0x89e   : > { %v1511_v39 = vpop.f32.mrf.mxu0 }
 0x90f   : > { %v1516_v40 = vpop.xlane.xlu1 %1515 }
 0x910   : > { %v1517_v41 = vmul.f32 %v1516_v40, %v2373_v60 }
 0x912   : > { %v1518_v42 = vsub.f32 %v1513_v37, %v1517_v41 }
 0x914   : > { %v1519_v43 = vmul.f32 %v1518_v42, %v1518_v42 }
 0x916   : > { %v1520_v44 = vsel %vm1353_vm7, %v1519_v43, 0.0 }
 0x917   : > { %1521 = vadd.xlane.f32.xlu2 %v1520_v44 }
 0x98a   : > { %v1522_v45 = vpop.xlane.xlu2 %1521 }
 0x98b   : > { %v1523_v46 = vmul.f32 %v1522_v45, %v2373_v60 }
 0x98d   : > { %v1524_v47 = vadd.f32 1e-05, %v1523_v46 }
 0x98f   : > { %2007 = vrsqrt.f32 %v1524_v47  ;;  %vm1531_vm13 = vweird.f32 %v1524_v47 }
 0x995   : > { %v2008_v48 = vpop.eup %2007 }
 0x996   : > { %v1526_v49 = vmul.f32 %v2008_v48, %v1524_v47  ;;  %vm1532_vm12 = vweird.f32 %v2008_v48 }
 0x997   : > { %vm1533_vm14 = vmor %vm1531_vm13, %vm1532_vm12 }
 0x998   : > { %v1527_v50 = vmul.f32 %v2008_v48, %v1526_v49 }
 0x99a   : > { %v1528_v51 = vmul.f32 0.5, %v1527_v50 }
 0x99c   : > { %v1529_v52 = vsub.f32 1.5, %v1528_v51 }
 0x99e   : > { %v1530_v53 = vmul.f32 %v2008_v48, %v1529_v52 }
 0x9a0   : > { %v1534_v55 = vsel %vm1533_vm14, %v2008_v48, %v1530_v53 }
 0x9a1   : > { %v1535_v57 = vmul.f32 %v1534_v55, %v1518_v42 }
 0x9a3   : > { %v1540_v58 = vmul.f32 %v1985_v54, %v1535_v57 }
 0x9a5   : > { %v1545_v59 = vadd.f32 %v1986_v56, %v1540_v58 }
 0x9a7   : > { %1546 = vst.msk [vmem:[%s2247_s11] sm:$0x1f] %vm1353_vm7, %v1545_v59 }
 0x9a8 PF: > { %s2497_s1 = sld [smem:[#allocation5_spill]] }
 0x9a9   : > { %s2498_s24 = sld [smem:[#allocation3_spill]] }
 0x9aa   : > { %s2499_s25 = sld [smem:[#allocation4_spill]] }
 0x9ab   : > { %s2500_s26 = sld [smem:[#allocation6_spill]] }
 0x9ac   : > { %s2501_s27 = sld [smem:[#allocation7_spill]] }
 0x9ae   : > { %s27_s28 = sadd.s32 1, %s2497_s1  }
 0x9af   : > { %p24_p8 = scmp.ge.s32.totalorder %s27_s28, 6  }
 0x9b1   :  { %26 = sbr.rel (!%p24_p8) target bundleno = 10 (0xa), region = 158 }

</bundles_post_ra>
